<compile_context>
chip_gen: v6e
topology: v6e:2x2x1
jax: 0.10.0
libtpu: 0.0.40
codegen_flags: <defaults>
</compile_context>

<pallas_src>
import math
import numpy as np

import jax
import jax.numpy as jnp
from jax import lax
from jax.experimental import pallas as pl
from jax.experimental.pallas import tpu as pltpu


# ----------------------------------------------------------------------------
# Host-side sampler (mirror of the PyTorch LogUniformSampler; pure glue).
# ----------------------------------------------------------------------------
class LogUniformSampler:
    def __init__(self, ntokens):
        self.N = ntokens
        i = np.arange(self.N, dtype=np.float64)
        self.prob = (np.log(i + 2.0) - np.log(i + 1.0)) / np.log(self.N + 1.0)

    def expected_count(self, num_tries, samples):
        return [
            -(np.exp(num_tries * np.log(1.0 - self.prob[s])) - 1.0)
            for s in samples
        ]

    def accidental_match(self, labels, samples):
        sample_dict = {}
        for idx in range(len(samples)):
            sample_dict[samples[idx]] = idx
        result = []
        for idx in range(len(labels)):
            if labels[idx] in sample_dict:
                result.append((idx, sample_dict[labels[idx]]))
        return result

    def sample(self, size, labels, rng):
        log_N = np.log(self.N)
        x = rng.uniform(low=0.0, high=1.0, size=size)
        samples = (np.floor(np.exp(x * log_N)).astype(int) - 1).tolist()
        true_freq = self.expected_count(size, labels.tolist())
        sample_freq = self.expected_count(size, samples)
        return samples, true_freq, sample_freq


# ----------------------------------------------------------------------------
# Small helpers
# ----------------------------------------------------------------------------
def _round_up(v, m):
    return ((v + m - 1) // m) * m


def _pad_to(a, shape, value=0):
    pads = [(0, t - s) for s, t in zip(a.shape, shape)]
    if not any(p[1] for p in pads):
        return a
    return jnp.pad(a, pads, constant_values=value)


def _vmem_limit(buffer_bytes):
    """Buffer demand + temporaries headroom, capped below v7x physical VMEM."""
    return int(min(max(3 * buffer_bytes, 32 << 20), 56 << 20))


# ----------------------------------------------------------------------------
# Pallas kernels
# ----------------------------------------------------------------------------
def _make_sampled_kernel(ts):
    """Sampled-softmax logits kernel, one (batch-tile, sample-column-tile) step.

    x_ref     : (tm, H)   bf16 inputs                 (constant across j -> DMA elided)
    tw_ref    : (tm, H)   bf16 W[labels]              (only consumed on j == 0)
    tcorr_ref : (tm, 1)   f32  b[labels] - log(true_freq)
    mcol_ref  : (tm, 1)   i32  global output column to mask (-1 = none)
    sw_ref    : (ts, H)   bf16 streamed slice of [zero_row; W[sample_ids]; pad]
    scorr_ref : (1, ts)   f32  streamed slice of [0; b[samples]-log(freq); 0...]
    o_ref     : (tm, ts)  logits block; global column 0 = true logit
    """

    def kernel(x_ref, tw_ref, tcorr_ref, mcol_ref, sw_ref, scorr_ref, o_ref):
        j = pl.program_id(1)
        x = x_ref[...]                                           # (tm, H) bf16

        # sample logits: NT contraction on the MXU (bf16 in, f32 acc)
        s = lax.dot_general(
            x, sw_ref[...],
            dimension_numbers=(((1,), (1,)), ((), ())),
            preferred_element_type=jnp.float32)                  # (tm, ts)

        col = lax.broadcasted_iota(jnp.int32, s.shape, 1) + j * ts
        # accidental-match mask (applied before the bias/log-freq correction;
        # the tiny offset on masked entries is absorbed by the -1e37 constant).
        s = jnp.where(col == mcol_ref[...], jnp.float32(-1e37), s)
        s = s + scorr_ref[...]

        @pl.when(j == 0)
        def _():
            # true logit: elementwise rowsum with f32 accumulation; overwrite
            # global column 0 (the zero row of the augmented sampled slab).
            tl = (jnp.sum(x.astype(jnp.float32) * tw_ref[...].astype(jnp.float32),
                          axis=1, keepdims=True)
                  + tcorr_ref[...])                              # (tm, 1)
            o_ref[...] = jnp.where(col == 0, tl, s).astype(o_ref.dtype)

        @pl.when(j != 0)
        def _():
            o_ref[...] = s.astype(o_ref.dtype)

    return kernel


def _full_matmul_kernel(x_ref, w_ref, b_ref, o_ref):
    """Tiled full-vocab projection: out = x @ W.T + b.

    Accumulates directly into the resident f32 output block (no scratch); when
    the K grid axis has depth 1 this is a single dot + bias write.
    """
    acc = lax.dot_general(
        x_ref[...], w_ref[...],
        dimension_numbers=(((1,), (1,)), ((), ())),
        preferred_element_type=jnp.float32)

    @pl.when(pl.program_id(2) == 0)
    def _():
        o_ref[...] = acc + b_ref[...]

    @pl.when(pl.program_id(2) != 0)
    def _():
        o_ref[...] += acc


# ----------------------------------------------------------------------------
# Wrappers
# ----------------------------------------------------------------------------
def sampled_logits_pallas(x, true_w, true_corr, mask_col, samp_w, samp_corr,
                          *, tm=256, ts=1024, out_dtype=jnp.float32):
    """Returns (B, 1+S) logits with the true logit in column 0."""
    B, H = x.shape
    S = samp_w.shape[0]

    tm = min(tm, _round_up(B, 16))           # bf16 packs 16 rows per sublane tile
    Bp = _round_up(B, tm)

    ts = min(ts, _round_up(1 + S, 128))      # lane-dense output blocks
    Wtot = _round_up(1 + S, ts)

    xp = _pad_to(x.astype(jnp.bfloat16), (Bp, H))
    twp = _pad_to(true_w.astype(jnp.bfloat16), (Bp, H))
    tcp = _pad_to(true_corr.reshape(B, 1).astype(jnp.float32), (Bp, 1))

    # shift mask column by +1 (column 0 is the true logit); -1 stays "no mask"
    mcol = jnp.where(mask_col.reshape(B, 1) >= 0,
                     mask_col.reshape(B, 1) + 1, -1).astype(jnp.int32)
    mcp = _pad_to(mcol, (Bp, 1), value=-1)

    # augmented sampled slab: row 0 = zeros (true-logit column), rows 1..S =
    # W[sample_ids], rows S+1..Wtot-1 = zero padding (sliced off on return).
    sw_aug = jnp.zeros((Wtot, H), jnp.bfloat16).at[1:1 + S].set(
        samp_w.astype(jnp.bfloat16))
    sc_aug = jnp.zeros((1, Wtot), jnp.float32).at[0, 1:1 + S].set(
        samp_corr.reshape(S).astype(jnp.float32))

    grid = (Bp // tm, Wtot // ts)

    out_bytes = jnp.dtype(out_dtype).itemsize
    buf = (2 * tm * H * 2        # x   (double-buffered bf16)
           + 2 * tm * H * 2      # W[labels]
           + 2 * ts * H * 2      # sampled-weight stream
           + 2 * tm * ts * out_bytes   # output blocks
           + 2 * ts * 4 + 4 * tm * 4)  # corrections / mask

    out = pl.pallas_call(
        _make_sampled_kernel(ts),
        out_shape=jax.ShapeDtypeStruct((Bp, Wtot), out_dtype),
        grid_spec=pltpu.PrefetchScalarGridSpec(
            num_scalar_prefetch=0,
            grid=grid,
            in_specs=[
                pl.BlockSpec((tm, H), lambda i, j: (i, 0)),     # x
                pl.BlockSpec((tm, H), lambda i, j: (i, 0)),     # W[labels]
                pl.BlockSpec((tm, 1), lambda i, j: (i, 0)),     # true corr
                pl.BlockSpec((tm, 1), lambda i, j: (i, 0)),     # mask column
                pl.BlockSpec((ts, H), lambda i, j: (j, 0)),     # sampled W stream
                pl.BlockSpec((1, ts), lambda i, j: (0, j)),     # sampled corr stream
            ],
            out_specs=pl.BlockSpec((tm, ts), lambda i, j: (i, j)),
        ),
        compiler_params=pltpu.CompilerParams(
            dimension_semantics=("parallel", "parallel"),
            vmem_limit_bytes=_vmem_limit(buf),
        ),
        cost_estimate=pl.CostEstimate(
            flops=2 * Bp * Wtot * H,
            transcendentals=0,
            bytes_accessed=(2 * Bp * H * 2
                            + (Bp // tm) * Wtot * H * 2
                            + Bp * Wtot * out_bytes),
        ),
    )(xp, twp, tcp, mcp, sw_aug, sc_aug)
    return out[:B, :1 + S]


def full_logits_pallas(x, weight_pad_bf16, bias_pad_f32, *, n_valid, tn, tk, tm=256):
    """Tiled x @ W.T + b over the (pre-padded) full vocabulary."""
    B, H = x.shape
    Np, Hp = weight_pad_bf16.shape

    tm = min(tm, _round_up(B, 16))
    Bp = _round_up(B, tm)
    xp = _pad_to(x.astype(jnp.bfloat16), (Bp, Hp))

    grid = (Bp // tm, Np // tn, Hp // tk)

    buf = (2 * tm * tk * 2       # x tiles
           + 2 * tn * tk * 2     # weight tiles
           + 2 * tn * 4          # bias tiles
           + 2 * tm * tn * 4)    # output tiles (f32, resident across k)

    out = pl.pallas_call(
        _full_matmul_kernel,
        out_shape=jax.ShapeDtypeStruct((Bp, Np), jnp.float32),
        grid_spec=pltpu.PrefetchScalarGridSpec(
            num_scalar_prefetch=0,
            grid=grid,
            in_specs=[
                pl.BlockSpec((tm, tk), lambda i, j, k: (i, k)),   # x
                pl.BlockSpec((tn, tk), lambda i, j, k: (j, k)),   # weight (N, H)
                pl.BlockSpec((1, tn), lambda i, j, k: (0, j)),    # bias
            ],
            out_specs=pl.BlockSpec((tm, tn), lambda i, j, k: (i, j)),
        ),
        compiler_params=pltpu.CompilerParams(
            dimension_semantics=("parallel", "parallel", "arbitrary"),
            vmem_limit_bytes=_vmem_limit(buf),
        ),
        cost_estimate=pl.CostEstimate(
            flops=2 * Bp * Np * Hp,
            transcendentals=0,
            bytes_accessed=Bp * Hp * 2 + Np * Hp * 2 + Bp * Np * 4,
        ),
    )(xp, weight_pad_bf16, bias_pad_f32)
    return out[:B, :n_valid]


# ----------------------------------------------------------------------------
# SampledSoftmax module (JAX/Pallas version)
# ----------------------------------------------------------------------------
class SampledSoftmaxPallas:
    def __init__(self, ntokens, nsampled, nhid, key, *,
                 tn_full=1024, tk_full_max=2048):
        self.ntokens = ntokens
        self.nsampled = nsampled
        self.nhid = nhid
        self.sampler = LogUniformSampler(ntokens)

        kw, kb = jax.random.split(key)
        # weight init exactly as the PyTorch module (tied_weight is None branch)
        stdv = math.sqrt(3.0 / (ntokens + nhid))
        self.weight = jax.random.uniform(
            kw, (ntokens, nhid), jnp.float32, minval=-stdv, maxval=stdv)
        bb = 1.0 / math.sqrt(nhid)
        self.bias = jax.random.uniform(
            kb, (ntokens,), jnp.float32, minval=-bb, maxval=bb)
        # persistent bf16 copy for the MXU-bound weight streams
        self.weight_bf16 = self.weight.astype(jnp.bfloat16)

        # eval path: choose tiles once and pre-pad W / b at init (no per-call
        # full-vocab jnp.pad copy).
        self._tn = min(tn_full, _round_up(ntokens, 128))
        self._Np = _round_up(ntokens, self._tn)
        Hp = _round_up(nhid, 128)
        if Hp <= tk_full_max:
            self._tk = Hp                      # single K step: no accumulation loop
        else:
            self._tk = tk_full_max
            Hp = _round_up(nhid, tk_full_max)
        self._Hp = Hp
        self.weight_full = _pad_to(self.weight_bf16, (self._Np, self._Hp))
        self.bias_full = _pad_to(
            self.bias.reshape(1, ntokens).astype(jnp.float32), (1, self._Np))

    # training forward
    def forward_train(self, inputs, labels, np_rng):
        labels_np = np.asarray(labels)
        B = labels_np.shape[0]
        sample_ids, true_freq, sample_freq = self.sampler.sample(
            self.nsampled, labels_np, np_rng)

        # per-row accidental-match column (-1 = none) — exact dict semantics of
        # the reference sampler (at most one masked column per row).
        acc_hits = self.sampler.accidental_match(labels_np.tolist(), sample_ids)
        mask_col = np.full((B, 1), -1, dtype=np.int32)
        for (r, c) in acc_hits:
            mask_col[r, 0] = c

        sample_ids_j = jnp.asarray(sample_ids, dtype=jnp.int32)

        # host-side gathers + bias/log-freq folding (glue)
        # TODO(synk): move these gathers in-kernel (scalar-prefetched ids + DMA).
        true_w = self.weight_bf16[labels]                        # (B, H)
        samp_w = self.weight_bf16[sample_ids_j]                  # (S, H)
        true_corr = (self.bias[labels]
                     - jnp.log(jnp.asarray(true_freq, jnp.float32)))      # (B,)
        samp_corr = (self.bias[sample_ids_j]
                     - jnp.log(jnp.asarray(sample_freq, jnp.float32)))    # (S,)

        logits = sampled_logits_pallas(
            inputs, true_w, true_corr, jnp.asarray(mask_col),
            samp_w, samp_corr)
        new_targets = jnp.zeros((B,), dtype=jnp.int32)
        return logits, new_targets

    # eval forward (self.full): plain linear projection over all tokens
    def forward_eval(self, inputs):
        return full_logits_pallas(
            inputs, self.weight_full, self.bias_full,
            n_valid=self.ntokens, tn=self._tn, tk=self._tk)


# ----------------------------------------------------------------------------
# Demo / correctness check
# ----------------------------------------------------------------------------
if __name__ == "__main__":
    ntokens, nsampled, nhid, batch = 50, 16, 32, 8

    key = jax.random.PRNGKey(0)
    k_mod, k_x, k_lab = jax.random.split(key, 3)

    module = SampledSoftmaxPallas(ntokens, nsampled, nhid, k_mod)

    x = jax.random.normal(k_x, (batch, nhid), dtype=jnp.float32)
    labels = jax.random.randint(k_lab, (batch,), 0, ntokens, dtype=jnp.int32)

    np_rng = np.random.RandomState(0)  # deterministic host-side sampler

    logits, new_targets = module.forward_train(x, labels, np_rng)
    logits = jax.block_until_ready(logits)
    full = jax.block_until_ready(module.forward_eval(x))

    # ---- reference check (numpy, mirrors the PyTorch math; uses the same
    #      bf16-rounded matmul operands the kernels consume, f32 accumulate) ---
    Wb = np.asarray(module.weight_bf16.astype(jnp.float32))
    b = np.asarray(module.bias)
    xb = np.asarray(x.astype(jnp.bfloat16).astype(jnp.float32))
    lab = np.asarray(labels)

    np_rng_ref = np.random.RandomState(0)
    s_ids, t_freq, s_freq = module.sampler.sample(nsampled, lab, np_rng_ref)
    ref_true = np.sum(xb * Wb[lab], axis=1) + b[lab]
    ref_samp = xb @ Wb[s_ids].T + b[s_ids]
    for (r, c) in module.sampler.accidental_match(lab.tolist(), s_ids):
        ref_samp[r, c] = -1e37
    ref_true = ref_true - np.log(np.asarray(t_freq))
    ref_samp = ref_samp - np.log(np.asarray(s_freq))
    ref_logits = np.concatenate([ref_true[:, None], ref_samp], axis=1)
    ref_full = xb @ Wb.T + b

    assert np.allclose(np.asarray(logits), ref_logits, rtol=2e-3, atol=2e-3)
    assert np.allclose(np.asarray(full), ref_full, rtol=2e-3, atol=2e-3)
    assert np.all(np.asarray(new_targets) == 0)

    print("KERNEL_OK")
</pallas_src>

<mosaic_0001>
module attributes {stable_mosaic.version = 11 : i64} {
  func.func @kernel(%arg0: i32, %arg1: i32, %arg2: memref<16x32xbf16, #tpu.memory_space<vmem>>, %arg3: memref<16x32xbf16, #tpu.memory_space<vmem>>, %arg4: memref<16x1xf32, #tpu.memory_space<vmem>>, %arg5: memref<16x1xi32, #tpu.memory_space<vmem>>, %arg6: memref<128x32xbf16, #tpu.memory_space<vmem>>, %arg7: memref<1x128xf32, #tpu.memory_space<vmem>>, %arg8: memref<16x128xf32, #tpu.memory_space<vmem>>) attributes {dimension_semantics = [#tpu.dimension_semantics<parallel>, #tpu.dimension_semantics<parallel>], iteration_bounds = array<i64: 1, 1>, scalar_prefetch = 0 : i64, scratch_operands = 0 : i64, tpu.core_type = #tpu.core_type<tc>, window_params = [{transform_indices = @transform_0, window_bounds = array<i64: 16, 32>}, {transform_indices = @transform_1, window_bounds = array<i64: 16, 32>}, {transform_indices = @transform_2, window_bounds = array<i64: 16, 1>}, {transform_indices = @transform_3, window_bounds = array<i64: 16, 1>}, {transform_indices = @transform_4, window_bounds = array<i64: 128, 32>}, {transform_indices = @transform_5, window_bounds = array<i64: 1, 128>}, {transform_indices = @transform_6, window_bounds = array<i64: 16, 128>}]} {
    %c0 = arith.constant 0 : index
    %c0_0 = arith.constant 0 : index
    %0 = vector.load %arg2[%c0, %c0_0] : memref<16x32xbf16, #tpu.memory_space<vmem>>, vector<16x32xbf16>
    %c0_1 = arith.constant 0 : index
    %c0_2 = arith.constant 0 : index
    %1 = vector.load %arg6[%c0_1, %c0_2] : memref<128x32xbf16, #tpu.memory_space<vmem>>, vector<128x32xbf16>
    %cst = arith.constant dense<0.000000e+00> : vector<16x128xf32>
    %2 = tpu.matmul %0, %1, %cst {dimension_numbers = #tpu.dot_dimension_numbers<[1], [1], [0], [0], [0, 0, 1, 0], [], []>} : vector<16x32xbf16>, vector<128x32xbf16>, vector<16x128xf32> -> vector<16x128xf32>
    %3 = tpu.iota {dimensions = array<i32: 1>} : vector<16x128xi32>
    %c128_i32 = arith.constant 128 : i32
    %4 = arith.muli %arg1, %c128_i32 : i32
    %5 = vector.broadcast %4 : i32 to vector<16x128xi32>
    %6 = arith.addi %3, %5 : vector<16x128xi32>
    %c0_3 = arith.constant 0 : index
    %c0_4 = arith.constant 0 : index
    %7 = vector.load %arg5[%c0_3, %c0_4] : memref<16x1xi32, #tpu.memory_space<vmem>>, vector<16x1xi32>
    %8 = vector.broadcast %7 : vector<16x1xi32> to vector<16x128xi32>
    %9 = arith.cmpi eq, %6, %8 : vector<16x128xi32>
    %cst_5 = arith.constant -9.99999993E+36 : f32
    %10 = vector.broadcast %cst_5 : f32 to vector<16x128xf32>
    %11 = arith.select %9, %10, %2 : vector<16x128xi1>, vector<16x128xf32>
    %c0_6 = arith.constant 0 : index
    %c0_7 = arith.constant 0 : index
    %12 = vector.load %arg7[%c0_6, %c0_7] : memref<1x128xf32, #tpu.memory_space<vmem>>, vector<1x128xf32>
    %13 = vector.broadcast %12 : vector<1x128xf32> to vector<16x128xf32>
    %14 = arith.addf %11, %13 : vector<16x128xf32>
    %c0_i32 = arith.constant 0 : i32
    %15 = arith.cmpi eq, %arg1, %c0_i32 : i32
    %16 = arith.extui %15 : i1 to i32
    %c0_i32_8 = arith.constant 0 : i32
    %17 = arith.cmpi ne, %16, %c0_i32_8 : i32
    scf.if %17 {
      %21 = arith.extf %0 : vector<16x32xbf16> to vector<16x32xf32>
      %c0_11 = arith.constant 0 : index
      %c0_12 = arith.constant 0 : index
      %22 = vector.load %arg3[%c0_11, %c0_12] : memref<16x32xbf16, #tpu.memory_space<vmem>>, vector<16x32xbf16>
      %23 = arith.extf %22 : vector<16x32xbf16> to vector<16x32xf32>
      %24 = arith.mulf %21, %23 : vector<16x32xf32>
      %cst_13 = arith.constant dense<0.000000e+00> : vector<16xf32>
      %25 = vector.multi_reduction <add>, %24, %cst_13 [1] : vector<16x32xf32> to vector<16xf32>
      %26 = vector.shape_cast %25 : vector<16xf32> to vector<16x1xf32>
      %c0_14 = arith.constant 0 : index
      %c0_15 = arith.constant 0 : index
      %27 = vector.load %arg4[%c0_14, %c0_15] : memref<16x1xf32, #tpu.memory_space<vmem>>, vector<16x1xf32>
      %28 = arith.addf %26, %27 : vector<16x1xf32>
      %c0_i32_16 = arith.constant 0 : i32
      %29 = vector.broadcast %c0_i32_16 : i32 to vector<16x128xi32>
      %30 = arith.cmpi eq, %6, %29 : vector<16x128xi32>
      %31 = vector.shape_cast %28 : vector<16x1xf32> to vector<16x1xf32>
      %32 = vector.broadcast %31 : vector<16x1xf32> to vector<16x128xf32>
      %33 = arith.select %30, %32, %14 : vector<16x128xi1>, vector<16x128xf32>
      %c0_17 = arith.constant 0 : index
      %c0_18 = arith.constant 0 : index
      %34 = vector.load %arg8[%c0_17, %c0_18] : memref<16x128xf32, #tpu.memory_space<vmem>>, vector<16x128xf32>
      tpu.vector_store %arg8[%c0_17, %c0_18], %33 {strides = array<i32>} : memref<16x128xf32, #tpu.memory_space<vmem>>, vector<16x128xf32>,
    } else {
    }
    %c0_i32_9 = arith.constant 0 : i32
    %18 = arith.cmpi ne, %arg1, %c0_i32_9 : i32
    %19 = arith.extui %18 : i1 to i32
    %c0_i32_10 = arith.constant 0 : i32
    %20 = arith.cmpi ne, %19, %c0_i32_10 : i32
    scf.if %20 {
      %c0_11 = arith.constant 0 : index
      %c0_12 = arith.constant 0 : index
      %21 = vector.load %arg8[%c0_11, %c0_12] : memref<16x128xf32, #tpu.memory_space<vmem>>, vector<16x128xf32>
      tpu.vector_store %arg8[%c0_11, %c0_12], %14 {strides = array<i32>} : memref<16x128xf32, #tpu.memory_space<vmem>>, vector<16x128xf32>,
    } else {
    }
    return
  }
  func.func @transform_0(%arg0: i32, %arg1: i32) -> (i32, i32) {
    %c0_i32 = arith.constant 0 : i32
    %c0_i32_0 = arith.constant 0 : i32
    return %arg0, %c0_i32 : i32, i32
  }
  func.func @transform_1(%arg0: i32, %arg1: i32) -> (i32, i32) {
    %c0_i32 = arith.constant 0 : i32
    %c0_i32_0 = arith.constant 0 : i32
    return %arg0, %c0_i32 : i32, i32
  }
  func.func @transform_2(%arg0: i32, %arg1: i32) -> (i32, i32) {
    %c0_i32 = arith.constant 0 : i32
    %c0_i32_0 = arith.constant 0 : i32
    return %arg0, %c0_i32 : i32, i32
  }
  func.func @transform_3(%arg0: i32, %arg1: i32) -> (i32, i32) {
    %c0_i32 = arith.constant 0 : i32
    %c0_i32_0 = arith.constant 0 : i32
    return %arg0, %c0_i32 : i32, i32
  }
  func.func @transform_4(%arg0: i32, %arg1: i32) -> (i32, i32) {
    %c0_i32 = arith.constant 0 : i32
    %c0_i32_0 = arith.constant 0 : i32
    return %arg1, %c0_i32 : i32, i32
  }
  func.func @transform_5(%arg0: i32, %arg1: i32) -> (i32, i32) {
    %c0_i32 = arith.constant 0 : i32
    %c0_i32_0 = arith.constant 0 : i32
    return %c0_i32, %arg1 : i32, i32
  }
  func.func @transform_6(%arg0: i32, %arg1: i32) -> (i32, i32) {
    %c0_i32 = arith.constant 0 : i32
    return %arg0, %arg1 : i32, i32
  }
}

</mosaic_0001>

<bundles_post_ra>
// kernel: tpu_custom_call.1
= control target key start
LH: loop header
LB: loop body
LE: loop exit
PB: predicated region body
PF: predicated region fallthrough
CT: control target
= control target key end

     0   :  { %v326_v1 = vmov 0.0   ;;  %vm88_vm0 = vcmask 261120   ;;  %vm327_vm1 = vmmov 0   ;;  %v328_v11 = vmov 0   ;;  %s426_s0 = inlined_call_operand.vmem [shape: bf16[16,32], index: 0, kind: input, shape index: {}]   ;;  %s427_s1 = inlined_call_operand.vmem [shape: bf16[16,32], index: 1, kind: input, shape index: {}]   ;;  %s428_s2 = inlined_call_operand.vmem [shape: f32[16,1], index: 2, kind: input, shape index: {}]   ;;  %s429_s3 = inlined_call_operand.vmem [shape: s32[16,1], index: 3, kind: input, shape index: {}]   ;;  %s430_s4 = inlined_call_operand.vmem [shape: bf16[128,32], index: 4, kind: input, shape index: {}]   ;;  %s431_s5 = inlined_call_operand.vmem [shape: f32[1,128], index: 5, kind: input, shape index: {}]   ;;  %s432_s6 = inlined_call_operand.hbm [shape: f32[16,128], index: 6, kind: output, shape index: {}]  }
   0x1   :  { %v294_v0 = vld [vmem:[%s430_s4 + $0x38] sm:$0xff]   ;;  %266 = vmatprep.subr.bf16.mxu0 %v326_v1  ;;  %v25_v2 = vld [vmem:[%s426_s0] sm:$0xff]   ;;  %282 = vmatprep.mubr.msk.bf16.mxu0 %vm327_vm1, %v326_v1  ;;  %v296_v10 = vld [vmem:[%s430_s4 + $0x30] sm:$0xff]  }
   0x2   :  { %v254_v3 = vld [vmem:[%s427_s1] sm:$0xff]   ;;  %v114_v4 = vsel %vm88_vm0, %v294_v0, 0  ;;  %v187_v5 = vunpack.c.l.bf16 %v25_v2  ;;  %v188_v7 = vunpack.c.h.bf16 %v25_v2  ;;  %292 = vset.pattern.permute.xlu1 %v328_v11  ;;  %293 = vset.pattern.permute.xlu0 %v328_v11  ;;  %v111_v15 = vsel %vm88_vm0, %v296_v10, 0 }
   0x3   :  { %v255_v6 = vunpack.c.l.bf16 %v254_v3  ;;  %267 = vmatpush3.bf16.xpose.msra.mxu0 %v114_v4  ;;  %v256_v8 = vunpack.c.h.bf16 %v254_v3  ;;  %v162_v16 = vld [vmem:[%s429_s3] sm:$0xff] }
   0x4   :  { %268 = vmatprep.subr.bf16.mxu0 %v326_v1  ;;  %165 = vperm.xlu1 %292, %v162_v16  }
   0x5   :  { %v193_v9 = vmul.f32 %v255_v6, %v187_v5  ;;  %v194_v12 = vmul.f32 %v256_v8, %v188_v7 }
   0x7   :  { %v195_v13 = vsel %vm88_vm0, %v193_v9, 0.0  ;;  %v198_v14 = vsel %vm88_vm0, %v194_v12, 0.0 }
   0x8   :  { %196 = vadd.xlane.f32.xlu0 %v195_v13 }
   0x9   :  { %11 = vsyncpa [#allocation3], 0  ;;  %v163_v17 = vld [vmem:[%s429_s3 + $0x8] sm:$0xff]  ;;  %v298_v20 = vld [vmem:[%s430_s4 + $0x20] sm:$0xff]   ;;  %v157_v36 = vlaneseq }
   0xa   :  { %v297_v18 = vld [vmem:[%s430_s4 + $0x28] sm:$0xff]   ;;  %168 = vperm.xlu1 %292, %v163_v17   ;;  %v105_v21 = vsel %vm88_vm0, %v298_v20, 0  ;;  %v299_v22 = vld [vmem:[%s430_s4 + $0x18] sm:$0xff]   ;;  %v300_v24 = vld [vmem:[%s430_s4 + $0x10] sm:$0xff]  }
   0xb   :  { %269 = vmatpush3.bf16.xpose.msra.mxu0 %v111_v15  ;;  %v108_v19 = vsel %vm88_vm0, %v297_v18, 0  ;;  %v102_v23 = vsel %vm88_vm0, %v299_v22, 0  ;;  %v99_v25 = vsel %vm88_vm0, %v300_v24, 0  ;;  %v301_v26 = vld [vmem:[%s430_s4 + $0x8] sm:$0xff]   ;;  %v302_v28 = vld [vmem:[%s430_s4] sm:$0xff]   ;;  %v158_v37 = vand.u32 127, %v157_v36 }
   0xc   :  { %199 = vadd.xlane.f32.xlu0 %v198_v14  ;;  %270 = vmatprep.subr.bf16.mxu0 %v326_v1  ;;  %v96_v27 = vsel %vm88_vm0, %v301_v26, 0  ;;  %v93_v29 = vsel %vm88_vm0, %v302_v28, 0  ;;  %v201_v30 = vld [vmem:[%s428_s2] sm:$0xff]  ;;  %v202_v33 = vld [vmem:[%s428_s2 + $0x8] sm:$0xff]  ;;  %s329_s2 = smov [#allocation2]  }
   0xd   :  { %v252_v42 = vld [vmem:[%s431_s5] ss:$0 sm:$0xff]  ;;  %vm205_vm4 = vcmp.eq.s32.totalorder %v158_v37, 0  ;;  %s231_s23 = sshll.u32 %s329_s2, 4  ;;  %s232_s23 = int_to_ptr.vmem [resolvable:$true] %s231_s23 }
   0xe   :  { %s304_s24 = scalar_lea.vmem %s232_s23, 256  ;;  %p309_p1 = scmp.lt.s32.totalorder %s232_s23, %s232_s23 }
   0xf   :  { %p305_p0 = scmp.ne.s32.totalorder %s232_s23, %s304_s24  ;;  %p310_p2 = scmp.lt.s32.totalorder %s304_s24, %s304_s24 }
  0x11   :  { %p311_p3 = por %p310_p2, %p309_p1 }
  0x13   :  { %271 = vmatpush3.bf16.xpose.msra.mxu0 %v108_v19  ;;  %p312_p4 = pnand %p311_p3, %p305_p0 }
  0x14   :  { %272 = vmatprep.subr.bf16.mxu0 %v326_v1 }
  0x1b   :  { %273 = vmatpush3.bf16.xpose.msra.mxu0 %v105_v21 }
  0x1c   :  { %274 = vmatprep.subr.bf16.mxu0 %v326_v1 }
  0x23   :  { %275 = vmatpush3.bf16.xpose.msra.mxu0 %v102_v23 }
  0x24   :  { %276 = vmatprep.subr.bf16.mxu0 %v326_v1 }
  0x2b   :  { %277 = vmatpush3.bf16.xpose.msra.mxu0 %v99_v25 }
  0x2c   :  { %278 = vmatprep.subr.bf16.mxu0 %v326_v1 }
  0x33   :  { %279 = vmatpush3.bf16.xpose.msra.mxu0 %v96_v27 }
  0x34   :  { %280 = vmatprep.subr.bf16.mxu0 %v326_v1 }
  0x3b   :  { %281 = vmatpush3.bf16.xpose.msra.mxu0 %v93_v29 }
  0x42   :  { %283 = vmatmul.mubr.msk.bf16.vlgmr.msra.gmra.mxu0 %vm88_vm0, %v25_v2 }
  0x7f   :  { %v166_v39 = vpop.permute.xlu1 %165 }
  0x80   :  { %vm170_vm2 = vcmp.eq.s32.totalorder %v158_v37, %v166_v39 }
  0x85   :  { %v169_v44 = vpop.permute.xlu1 %168 }
  0x86   :  { %vm171_vm3 = vcmp.eq.s32.totalorder %v158_v37, %v169_v44 }
  0x91   :  { %v197_v31 = vpop.xlane.xlu0 %196 }
  0x92   :  { %v203_v32 = vadd.f32 %v201_v30, %v197_v31 }
  0x94   :  { %208 = vperm.xlu0 %293, %v203_v32  }
  0x95   :  { %v200_v34 = vpop.xlane.xlu0 %199 }
  0x96   :  { %v204_v35 = vadd.f32 %v202_v33, %v200_v34 }
  0x98   :  { %213 = vperm.xlu1 %292, %v204_v35  }
 0x102   :  { %v150_v38 = vpop.f32.mrf.mxu0 }
 0x103   :  { %v172_v43 = vsel %vm170_vm2, -1e+37, %v150_v38 }
 0x104   :  { %v284_v40 = vpop.f32.mrf.mxu0  ;;  %v181_v46 = vadd.f32 %v252_v42, %v172_v43 }
 0x106   :  { %v153_v41 = vpop.f32.mrf.mxu0 }
 0x107   :  { %v173_v47 = vsel %vm171_vm3, -1e+37, %v153_v41 }
 0x108   :  { %v285_v45 = vpop.f32.mrf.mxu0  ;;  %v182_v50 = vadd.f32 %v252_v42, %v173_v47 }
 0x10f   :  { %v209_v48 = vpop.permute.xlu0 %208 }
 0x110   :  { %v216_v49 = vsel %vm205_vm4, %v209_v48, %v181_v46 }
 0x111   :  { %218 = vst [vmem:[#allocation2] sm:$0xff] %v216_v49 }
 0x113   :  { %v214_v51 = vpop.permute.xlu1 %213 }
 0x114   :  { %v217_v52 = vsel %vm205_vm4, %v214_v51, %v182_v50 }
 0x115   :  { %219 = vst [vmem:[#allocation2 + $0x8] sm:$0xff] %v217_v52 }
 0x116   :  { %315 = shalt.err (!%p312_p4)
}
 0x117   :  { %s330_s5 = smov 128   ;;  %s331_s25 = smov 8  }
 0x118   :  { %237 = dma.vmem_to_hbm [thread:$0]  %s232_s23, 256, %s432_s6, [#allocation3], %s330_s5, %s330_s5, %s331_s25  }
 0x119   :  { %324 = dma.done.wait [#allocation3], 256  }
 0x11a   :  { %325 = vsyncadd [#allocation3], 4294967040 }
 0x11b   :  { %241 = vsyncpa [#allocation3], 1 }

</bundles_post_ra>
